<compile_context>
chip_gen: v5e
topology: v5e:2x2
jax: 0.10.0
libtpu: 0.0.40
codegen_flags: <defaults>
</compile_context>

<pallas_src>
import functools

import jax
import jax.numpy as jnp
from jax.experimental import pallas as pl
from jax.experimental.pallas import tpu as pltpu


def cat_add_kernel(x_pad_ref, y_ref, o_ref, *, nx):
    # x_pad_ref: (Nt, D)  x padded with don't-care rows to the output row count
    # y_ref:     (1,  D)  broadcast row
    # o_ref:     (Nt, D)  with Nt = nx + 1
    nt, d = o_ref.shape

    # Upcast once to f32 (no-op for f32 inputs; avoids bf16 VALU emulation on v5e).
    x = x_pad_ref[...].astype(jnp.float32)   # (Nt, D)
    y = y_ref[...].astype(jnp.float32)       # (1, D)
    two_y = y + y                            # 2*y, exact

    # concat(x, y)[i] == x[i] for i < nx, else y  ->  one VPU select over the tile.
    row = jax.lax.broadcasted_iota(jnp.int32, (nt, d), 0)
    z = jnp.where(row < nx, x, y)            # (Nt, D); y broadcasts on the false branch

    # One full-tile add, one unmasked full-tile store.
    o_ref[...] = (z + two_y).astype(o_ref.dtype)


def model_forward(x, y):
    nx, d = x.shape
    ny, dy = y.shape
    assert d == dy, "feature dims must match for concat"
    # Broadcast rule for (nx+ny, d) + (ny, d): only ny == 1 is valid
    # (ny == nx + ny is impossible), matching PyTorch broadcasting.
    assert ny == 1, "z + 2*y requires y to have a single (broadcast) row"
    nt = nx + ny

    # Pad x rows up to the output row count so the kernel operates on one full
    # tile; the pad rows are overwritten by the select, value is irrelevant.
    x_pad = jnp.pad(x, ((0, nt - nx), (0, 0)))

    out_shape = jax.ShapeDtypeStruct((nt, d), x.dtype)
    # Micro problem: no grid, whole arrays resident in VMEM, single invocation.
    return pl.pallas_call(
        functools.partial(cat_add_kernel, nx=nx),
        out_shape=out_shape,
        in_specs=[
            pl.BlockSpec(memory_space=pltpu.MemorySpace.VMEM),
            pl.BlockSpec(memory_space=pltpu.MemorySpace.VMEM),
        ],
        out_specs=pl.BlockSpec(memory_space=pltpu.MemorySpace.VMEM),
    )(x_pad, y)


if __name__ == "__main__":
    key = jax.random.PRNGKey(0)
    # Small shapes consistent with the module (x ~ randn, y = ones), chosen so
    # the forward is well defined and the output is one (8,128) f32 vreg tile.
    Nx, Ny, D = 7, 1, 128
    x = jax.random.normal(key, (Nx, D), dtype=jnp.float32)
    y = jnp.ones((Ny, D), dtype=jnp.float32)

    w = jax.block_until_ready(model_forward(x, y))

    # Pure-JAX reference for correctness (exact in f32).
    z_ref = jnp.concatenate([x, y], axis=0)
    w_ref = z_ref + 2.0 * y
    assert w.shape == (Nx + Ny, D)
    assert jnp.allclose(w, w_ref, atol=1e-6, rtol=1e-6)

    print("KERNEL_OK")
</pallas_src>

<mosaic_0001>
module attributes {stable_mosaic.version = 11 : i64} {
  func.func @cat_add_kernel(%arg0: memref<8x128xf32, #tpu.memory_space<vmem>>, %arg1: memref<1x128xf32, #tpu.memory_space<vmem>>, %arg2: memref<8x128xf32, #tpu.memory_space<vmem>>) attributes {dimension_semantics = [], scalar_prefetch = 0 : i64, scratch_operands = 0 : i64, tpu.core_type = #tpu.core_type<tc>} {
    %c0 = arith.constant 0 : index
    %c0_0 = arith.constant 0 : index
    %0 = vector.load %arg0[%c0, %c0_0] : memref<8x128xf32, #tpu.memory_space<vmem>>, vector<8x128xf32>
    %c0_1 = arith.constant 0 : index
    %c0_2 = arith.constant 0 : index
    %1 = vector.load %arg1[%c0_1, %c0_2] : memref<1x128xf32, #tpu.memory_space<vmem>>, vector<1x128xf32>
    %2 = arith.addf %1, %1 : vector<1x128xf32>
    %3 = tpu.iota {dimensions = array<i32: 0>} : vector<8x128xi32>
    %c7_i32 = arith.constant 7 : i32
    %4 = vector.broadcast %c7_i32 : i32 to vector<8x128xi32>
    %5 = arith.cmpi slt, %3, %4 : vector<8x128xi32>
    %6 = vector.shape_cast %1 : vector<1x128xf32> to vector<1x128xf32>
    %7 = vector.broadcast %6 : vector<1x128xf32> to vector<8x128xf32>
    %8 = arith.select %5, %0, %7 : vector<8x128xi1>, vector<8x128xf32>
    %9 = vector.broadcast %2 : vector<1x128xf32> to vector<8x128xf32>
    %10 = arith.addf %8, %9 : vector<8x128xf32>
    %c0_3 = arith.constant 0 : index
    %c0_4 = arith.constant 0 : index
    %11 = vector.load %arg2[%c0_3, %c0_4] : memref<8x128xf32, #tpu.memory_space<vmem>>, vector<8x128xf32>
    tpu.vector_store %arg2[%c0_3, %c0_4], %10 {strides = array<i32>} : memref<8x128xf32, #tpu.memory_space<vmem>>, vector<8x128xf32>,
    return
  }
}

</mosaic_0001>

<bundles_post_ra>
// kernel: tpu_custom_call.1
= control target key start
LH: loop header
LB: loop body
LE: loop exit
PB: predicated region body
PF: predicated region fallthrough
CT: control target
= control target key end

     0   :  { %7 = vsyncpa [#allocation3], 0  ;;  %s182_s0 = inlined_call_operand.hbm [shape: f32[8,128], index: 0, kind: input, shape index: {}]   ;;  %s183_s1 = inlined_call_operand.hbm [shape: f32[1,128], index: 1, kind: input, shape index: {}]   ;;  %s184_s2 = inlined_call_operand.hbm [shape: f32[8,128], index: 2, kind: output, shape index: {}]  }
   0x1   :  { %8 = vsyncpa [#allocation6], 0 }
   0x2   :  { %9 = vsyncpa [#allocation4], 0  ;;  %s15_s11 = sshll.u32 %s182_s0, 4  ;;  %s155_s12 = smov [#allocation2]   ;;  %s16_s11 = int_to_ptr.hbm [resolvable:$true] %s15_s11 }
   0x3   :  { %s17_s13 = sshll.u32 %s155_s12, 4  ;;  %s26_s16 = sshll.u32 %s183_s1, 4  ;;  %s18_s13 = int_to_ptr.vmem [resolvable:$true] %s17_s13  ;;  %s27_s16 = int_to_ptr.hbm [resolvable:$true] %s26_s16 }
   0x4   :  { %20 = dma.hbm_to_vmem [thread:$0]  %s16_s11, 128, %s18_s13, [#allocation3]  }
   0x5   :  { %s156_s17 = smov [#allocation5]  }
   0x6   :  { %s28_s18 = sshll.u32 %s156_s17, 4  ;;  %s29_s18 = int_to_ptr.vmem [resolvable:$true] %s28_s18 }
   0x7   :  { %31 = dma.hbm_to_vmem [thread:$0]  %s27_s16, 16, %s29_s18, [#allocation6]  }
   0x8   :  { %149 = dma.done.wait [#allocation3], 128  }
   0x9   :  { %150 = vsyncadd [#allocation3], 4294967168 }
   0xa   :  { %151 = dma.done.wait [#allocation6], 16  }
   0xb   :  { %152 = vsyncadd [#allocation6], 4294967280  ;;  %v43_v0 = vlaneseq  ;;  %v40_v2 = vld [vmem:[#allocation2] sm:$0xff]  ;;  %v41_v3 = vld [vmem:[#allocation5] sm:$0x1]  ;;  %s157_s0 = smov [#allocation7]  }
   0xc   :  { %v76_v4 = vld [vmem:[#allocation5] ss:$0 sm:$0xff]  ;;  %v42_v5 = vadd.f32 %v41_v3, %v41_v3  ;;  %s60_s1 = sshll.u32 %s157_s0, 4  ;;  %s62_s21 = sshll.u32 %s184_s2, 4  ;;  %s61_s1 = int_to_ptr.vmem [resolvable:$true] %s60_s1  ;;  %s63_s21 = int_to_ptr.hbm [resolvable:$true] %s62_s21 }
   0xd   :  { %v44_v1 = vshrl.u32 %v43_v0, 7 }
   0xe   :  { %v51_v7 = vperm.slane %v42_v5, 0 }
   0xf   :  { %vm45_vm0 = vcmp.lt.s32.totalorder %v44_v1, 7 }
  0x10   :  { %v49_v6 = vsel %vm45_vm0, %v40_v2, %v76_v4 }
  0x11   :  { %v53_v8 = vadd.f32 %v51_v7, %v49_v6 }
  0x13   :  { %54 = vst [vmem:[#allocation7] sm:$0xff] %v53_v8 }
  0x14   :  { %65 = dma.vmem_to_hbm [thread:$0]  %s61_s1, 128, %s63_s21, [#allocation4]  }
  0x15   :  { %153 = dma.done.wait [#allocation4], 128  }
  0x16   :  { %154 = vsyncadd [#allocation4], 4294967168 }
  0x17   :  { %70 = vsyncpa [#allocation3], 1 }
  0x18   :  { %71 = vsyncpa [#allocation6], 1 }
  0x19   :  { %72 = vsyncpa [#allocation4], 1 }

</bundles_post_ra>
